<compile_context>
chip_gen: v7x
topology: tpu7x:2x2x1
jax: 0.10.0
libtpu: 0.0.40
codegen_flags: <defaults>
</compile_context>

<pallas_src>
import functools

import jax
import jax.numpy as jnp
from jax import lax
from jax.experimental import pallas as pl
from jax.experimental.pallas import tpu as pltpu

_LANE = 128


def _round_up(x, m):
    return ((x + m - 1) // m) * m


def _nsp_kernel(x_ref, w_ref, b_ref, o_ref):
    # x_ref: (TB, H)   w_ref: (Cpad, H)   b_ref: (1, C)   o_ref: (TB, C), f32
    logits = lax.dot_general(
        x_ref[...],
        w_ref[...],
        dimension_numbers=(((1,), (1,)), ((), ())),  # x @ w.T on the MXU
        preferred_element_type=jnp.float32,
    )
    c = o_ref.shape[1]
    # Keep only the real class columns; padded weight rows are zero so they
    # contributed nothing to these columns anyway.
    o_ref[...] = (logits[:, :c] + b_ref[...].astype(jnp.float32)).astype(o_ref.dtype)


def prepare_nsp_params(weight, bias):
    """One-time parameter prep (do this at init, not per call).

    weight: [C, H] (PyTorch nn.Linear layout), bias: [C].
    Returns weight zero-padded to [Cpad, H] (Cpad = roundup(C, 128)) so the MXU
    gets a full-width tile, and bias reshaped to [1, C] (unpadded).
    """
    C, H = weight.shape
    Cpad = _round_up(C, _LANE)
    w_p = jnp.zeros((Cpad, H), dtype=weight.dtype).at[:C, :].set(weight)
    b_p = bias.reshape(1, C)
    return w_p, b_p


@functools.partial(jax.jit, static_argnames=("block_b",))
def next_sentence_prediction(cls_embedding, weight_padded, bias_2d, *, block_b=1024):
    """cls_embedding: [B, H]; weight_padded: [Cpad, H]; bias_2d: [1, C].

    Returns logits [B, C] in float32 (same semantics as nn.Linear(H, C)).
    """
    B, H = cls_embedding.shape
    Cpad, Hw = weight_padded.shape
    C = bias_2d.shape[1]
    assert Hw == H and Cpad % _LANE == 0 and C <= Cpad

    # Batch tile: multiple of 8 sublanes; no wrapper-side padding of x.
    TB = min(block_b, _round_up(B, 8))
    # v7x has 2 TensorCores: keep >= 2 grid steps so the "parallel" axis shards.
    if pl.cdiv(B, TB) < 2 and B > 8:
        TB = _round_up(pl.cdiv(B, 2), 8)
    grid = (pl.cdiv(B, TB),)

    x_bytes = jnp.dtype(cls_embedding.dtype).itemsize
    w_bytes = jnp.dtype(weight_padded.dtype).itemsize
    cost = pl.CostEstimate(
        flops=2 * B * H * C,
        transcendentals=0,
        bytes_accessed=(B * H * x_bytes          # activations read
                        + Cpad * H * w_bytes     # weight read (VMEM-resident)
                        + C * 4                  # bias read
                        + B * C * 4),            # logits write (f32)
    )

    out = pl.pallas_call(
        _nsp_kernel,
        out_shape=jax.ShapeDtypeStruct((B, C), jnp.float32),
        grid_spec=pl.GridSpec(
            grid=grid,
            in_specs=[
                pl.BlockSpec((TB, H), lambda i: (i, 0)),     # activations: tiled over batch
                pl.BlockSpec((Cpad, H), lambda i: (0, 0)),   # weight: VMEM-resident
                pl.BlockSpec((1, C), lambda i: (0, 0)),      # bias: VMEM-resident
            ],
            out_specs=pl.BlockSpec((TB, C), lambda i: (i, 0)),
        ),
        compiler_params=pltpu.CompilerParams(
            dimension_semantics=("parallel",),
            vmem_limit_bytes=32 * 1024 * 1024,
        ),
        cost_estimate=cost,
    )(cls_embedding, weight_padded, bias_2d)

    return out


if __name__ == "__main__":
    # Small synthetic shapes consistent with the module's forward.
    batch, hidden, num_classes = 8, 32, 2

    key = jax.random.PRNGKey(0)
    k_x, k_w, k_b, k_x2 = jax.random.split(key, 4)

    cls_embedding = jax.random.normal(k_x, (batch, hidden), dtype=jnp.float32)
    # Deterministic parameter init (synthetic, not a checkpoint load), PyTorch layout.
    weight = jax.random.normal(k_w, (num_classes, hidden), dtype=jnp.float32) * 0.02
    bias = jax.random.normal(k_b, (num_classes,), dtype=jnp.float32) * 0.02

    # One-time parameter prep (lane-padding of the weight's class axis only).
    w_pad, b_2d = prepare_nsp_params(weight, bias)

    logits = next_sentence_prediction(cls_embedding, w_pad, b_2d)
    logits = jax.block_until_ready(logits)

    # Reference check against plain JAX (same semantics as nn.Linear).
    ref = cls_embedding @ weight.T + bias
    assert logits.shape == (batch, num_classes)
    assert jnp.allclose(logits, ref, atol=1e-5, rtol=1e-5)

    # Ragged batch (B not a multiple of the tile): exercises the cdiv grid and
    # the masked write of the partial last output tile.
    batch2 = 13
    x2 = jax.random.normal(k_x2, (batch2, hidden), dtype=jnp.float32)
    logits2 = jax.block_until_ready(
        next_sentence_prediction(x2, w_pad, b_2d, block_b=8))
    ref2 = x2 @ weight.T + bias
    assert logits2.shape == (batch2, num_classes)
    assert jnp.allclose(logits2, ref2, atol=1e-5, rtol=1e-5)

    # TODO(synk): `labels` / loss path not implemented — self.loss_fn is undefined
    # in the original module, so only the logits branch is reproduced.
    print("KERNEL_OK")
</pallas_src>

<mosaic_0001>
module attributes {stable_mosaic.version = 11 : i64} {
  func.func @_nsp_kernel(%arg0: i32, %arg1: memref<8x32xf32, #tpu.memory_space<vmem>>, %arg2: memref<128x32xf32, #tpu.memory_space<vmem>>, %arg3: memref<1x2xf32, #tpu.memory_space<vmem>>, %arg4: memref<8x2xf32, #tpu.memory_space<vmem>>) attributes {dimension_semantics = [#tpu.dimension_semantics<parallel>], iteration_bounds = array<i64: 1>, scalar_prefetch = 0 : i64, scratch_operands = 0 : i64, tpu.core_type = #tpu.core_type<tc>, window_params = [{transform_indices = @transform_0, window_bounds = array<i64: 8, 32>}, {pipeline_mode = #tpu.pipeline_mode<synchronous>, transform_indices = @transform_1, window_bounds = array<i64: 128, 32>}, {pipeline_mode = #tpu.pipeline_mode<synchronous>, transform_indices = @transform_2, window_bounds = array<i64: 1, 2>}, {transform_indices = @transform_3, window_bounds = array<i64: 8, 2>}]} {
    %c0 = arith.constant 0 : index
    %c0_0 = arith.constant 0 : index
    %0 = vector.load %arg1[%c0, %c0_0] : memref<8x32xf32, #tpu.memory_space<vmem>>, vector<8x32xf32>
    %c0_1 = arith.constant 0 : index
    %c0_2 = arith.constant 0 : index
    %1 = vector.load %arg2[%c0_1, %c0_2] : memref<128x32xf32, #tpu.memory_space<vmem>>, vector<128x32xf32>
    %cst = arith.constant dense<0.000000e+00> : vector<8x128xf32>
    %2 = tpu.matmul %0, %1, %cst {dimension_numbers = #tpu.dot_dimension_numbers<[1], [1], [0], [0], [0, 0, 1, 0], [], []>} : vector<8x32xf32>, vector<128x32xf32>, vector<8x128xf32> -> vector<8x128xf32>
    %3 = vector.extract_strided_slice %2 {offsets = [0, 0], sizes = [8, 2], strides = [1, 1]} : vector<8x128xf32> to vector<8x2xf32>
    %c0_3 = arith.constant 0 : index
    %c0_4 = arith.constant 0 : index
    %4 = vector.load %arg3[%c0_3, %c0_4] : memref<1x2xf32, #tpu.memory_space<vmem>>, vector<1x2xf32>
    %5 = vector.broadcast %4 : vector<1x2xf32> to vector<8x2xf32>
    %6 = arith.addf %3, %5 : vector<8x2xf32>
    %c0_5 = arith.constant 0 : index
    %c0_6 = arith.constant 0 : index
    %7 = vector.load %arg4[%c0_5, %c0_6] : memref<8x2xf32, #tpu.memory_space<vmem>>, vector<8x2xf32>
    tpu.vector_store %arg4[%c0_5, %c0_6], %6 {strides = array<i32>} : memref<8x2xf32, #tpu.memory_space<vmem>>, vector<8x2xf32>,
    return
  }
  func.func @transform_0(%arg0: i32) -> (i32, i32) {
    %c0_i32 = arith.constant 0 : i32
    %c0_i32_0 = arith.constant 0 : i32
    return %arg0, %c0_i32 : i32, i32
  }
  func.func @transform_1(%arg0: i32) -> (i32, i32) {
    %c0_i32 = arith.constant 0 : i32
    %c0_i32_0 = arith.constant 0 : i32
    %c0_i32_1 = arith.constant 0 : i32
    return %c0_i32, %c0_i32_0 : i32, i32
  }
  func.func @transform_2(%arg0: i32) -> (i32, i32) {
    %c0_i32 = arith.constant 0 : i32
    %c0_i32_0 = arith.constant 0 : i32
    %c0_i32_1 = arith.constant 0 : i32
    return %c0_i32, %c0_i32_0 : i32, i32
  }
  func.func @transform_3(%arg0: i32) -> (i32, i32) {
    %c0_i32 = arith.constant 0 : i32
    %c0_i32_0 = arith.constant 0 : i32
    return %arg0, %c0_i32 : i32, i32
  }
}

</mosaic_0001>

<bundles_post_ra>
// kernel: next_sentence_prediction.1
= control target key start
LH: loop header
LB: loop body
LE: loop exit
PB: predicated region body
PF: predicated region fallthrough
CT: control target
= control target key end

     0   :  { %vm31_vm0 = vcmask 261120   ;;  %v272_v0 = vmov 0.0|0.0   ;;  %vm273_vm2 = vmmov 0   ;;  %v274_v4 = vmov 0.0   ;;  %s375_s1 = inlined_call_operand.vmem [shape: f32[128,32], index: 1, kind: input, shape index: {}]   ;;  %s376_s0 = inlined_call_operand.vmem [shape: f32[8,32], index: 0, kind: input, shape index: {}]   ;;  %s377_s2 = inlined_call_operand.vmem [shape: f32[1,2], index: 2, kind: input, shape index: {}]   ;;  %s378_s3 = inlined_call_operand.vmem [shape: f32[8,2], index: 3, kind: output, shape index: {}]  }
   0x1   :  { %237 = vmatprep.subr.bf16.mxu0 %v272_v0  ;;  %v15_v1 = vld [vmem:[%s375_s1] sm:$0xff]  ;;  %v16_v2 = vld [vmem:[%s375_s1 + $0x8] sm:$0xff]  ;;  %vm303_vm1 = vmpackc.low %vm31_vm0, %vm31_vm0  ;;  %234 = vmatprep.mubr.msk.f32.mxu0 %vm273_vm2, %v274_v4  ;;  %vm161_vm3 = vcmask 15360  }
   0x2   :  { %v238_v5 = vpack.c.bf16 %v16_v2, %v15_v1  ;;  %v17_v6 = vld [vmem:[%s375_s1 + $0x10] sm:$0xff]  ;;  %v18_v7 = vld [vmem:[%s375_s1 + $0x18] sm:$0xff]  ;;  %v19_v9 = vld [vmem:[%s375_s1 + $0x20] sm:$0xff] }
   0x3   :  { %v242_v8 = vpack.c.bf16 %v18_v7, %v17_v6  ;;  %v20_v10 = vld [vmem:[%s375_s1 + $0x28] sm:$0xff]  ;;  %v21_v12 = vld [vmem:[%s375_s1 + $0x30] sm:$0xff]  ;;  %v22_v13 = vld [vmem:[%s375_s1 + $0x38] sm:$0xff] }
   0x4   :  { %240 = vmatpush3.bf16.xpose.msk.msra.mxu0 %vm303_vm1, %v238_v5  ;;  %v246_v11 = vpack.c.bf16 %v20_v10, %v19_v9  ;;  %v250_v14 = vpack.c.bf16 %v22_v13, %v21_v12  ;;  %v23_v15 = vld [vmem:[%s375_s1 + $0x40] sm:$0xff]  ;;  %v24_v16 = vld [vmem:[%s375_s1 + $0x48] sm:$0xff]  ;;  %v25_v18 = vld [vmem:[%s375_s1 + $0x50] sm:$0xff] }
   0x5   :  { %241 = vmatprep.subr.bf16.mxu0 %v272_v0  ;;  %v254_v17 = vpack.c.bf16 %v24_v16, %v23_v15  ;;  %v26_v19 = vld [vmem:[%s375_s1 + $0x58] sm:$0xff]  ;;  %v27_v21 = vld [vmem:[%s375_s1 + $0x60] sm:$0xff]  ;;  %v28_v22 = vld [vmem:[%s375_s1 + $0x68] sm:$0xff] }
   0x6   :  { %v258_v20 = vpack.c.bf16 %v26_v19, %v25_v18  ;;  %v262_v23 = vpack.c.bf16 %v28_v22, %v27_v21  ;;  %v29_v24 = vld [vmem:[%s375_s1 + $0x70] sm:$0xff]  ;;  %v30_v25 = vld [vmem:[%s375_s1 + $0x78] sm:$0xff]  ;;  %v14_v27 = vld [vmem:[%s376_s0] sm:$0xff] }
   0x7   :  { %v266_v26 = vpack.c.bf16 %v30_v25, %v29_v24  ;;  %v184_v28 = vld [vmem:[%s377_s2] ss:$0 sm:$0xff] }
   0xc   :  { %244 = vmatpush3.bf16.xpose.msk.msra.mxu0 %vm303_vm1, %v242_v8 }
   0xd   :  { %245 = vmatprep.subr.bf16.mxu0 %v272_v0 }
  0x14   :  { %248 = vmatpush3.bf16.xpose.msk.msra.mxu0 %vm303_vm1, %v246_v11 }
  0x15   :  { %249 = vmatprep.subr.bf16.mxu0 %v272_v0 }
  0x1c   :  { %252 = vmatpush3.bf16.xpose.msk.msra.mxu0 %vm303_vm1, %v250_v14 }
  0x1d   :  { %253 = vmatprep.subr.bf16.mxu0 %v272_v0 }
  0x24   :  { %256 = vmatpush3.bf16.xpose.msk.msra.mxu0 %vm303_vm1, %v254_v17 }
  0x25   :  { %257 = vmatprep.subr.bf16.mxu0 %v272_v0 }
  0x2c   :  { %260 = vmatpush3.bf16.xpose.msk.msra.mxu0 %vm303_vm1, %v258_v20 }
  0x2d   :  { %261 = vmatprep.subr.bf16.mxu0 %v272_v0 }
  0x34   :  { %264 = vmatpush3.bf16.xpose.msk.msra.mxu0 %vm303_vm1, %v262_v23 }
  0x35   :  { %265 = vmatprep.subr.bf16.mxu0 %v272_v0 }
  0x3c   :  { %268 = vmatpush3.bf16.xpose.msk.msra.mxu0 %vm303_vm1, %v266_v26 }
  0x43   :  { %235 = vmatmul.mubr.msk.f32.vlgmr.msra.gmra.mrb[0].mxu0 %vm31_vm0, %v14_v27 }
 0x116   :  { %v149_v29 = vpop.f32.mrb[0].mxu0 }
 0x117   :  { %v160_v30 = vadd.f32 %v184_v28, %v149_v29  ;;  %v236_v31 = vpop.f32.mrb[1].mxu0 }
 0x119   :  { %162 = vst.msk [vmem:[%s378_s3] sm:$0xff] %vm161_vm3, %v160_v30 }

</bundles_post_ra>
